<compile_context>
chip_gen: v6e
topology: v6e:2x2x1
jax: 0.10.0
libtpu: 0.0.40
codegen_flags: <defaults>
</compile_context>

<pallas_src>
import functools

import jax
import jax.numpy as jnp
from jax.experimental import pallas as pl
from jax.experimental.pallas import tpu as pltpu


def _cdiv(a, b):
    return -(-a // b)


def _round_down(x, m):
    return (x // m) * m


def _round_up(x, m):
    return _cdiv(x, m) * m


def _physical_vmem_bytes():
    """Physical VMEM per TensorCore; falls back to the v7x 64 MiB minimum."""
    try:
        cap = int(pltpu.get_tpu_info().vmem_capacity_bytes)
        if cap > 0:
            return cap
    except Exception:
        pass
    return 64 << 20


def _choose_tiles(r, hw, itemsize, budget_bytes):
    """Pick (row_tile, hw_tile) so one block -- double-buffered input plus the
    ~3 block-sized f32 intermediates the kernel creates -- fits budget_bytes."""
    bpe = 2 * itemsize + 3 * 4                 # dbl-buffered input + f32 temps
    max_elems = max(budget_bytes // bpe, 8 * 128)

    # Row tile: multiple of 8 (or the full extent when r < 8).  Aim for >= 4
    # row blocks so v7x's two TensorCores both get work and the pipeline has
    # steps to overlap; keep room for a >=128-lane hw tile.
    if r <= 8:
        tr = r
    else:
        tr = min(_round_up(_cdiv(r, 4), 8), 256)
        tr = max(8, min(tr, _round_down(max_elems // 128, 8)))

    # hw tile: full extent if it fits (contiguous DMA, exact two-pass in one
    # block), otherwise the largest budget-fitting multiple of 128.
    t_hw_cap = max(128, _round_down(max_elems // tr, 128))
    t_hw = hw if hw <= t_hw_cap else t_hw_cap

    # Avoid a degenerate 1-step grid (no DMA/compute overlap) on non-tiny
    # inputs by splitting hw into ~4 pipeline steps.
    if (_cdiv(r, tr) * _cdiv(hw, t_hw) < 4
            and tr * hw * itemsize >= (1 << 20) and hw > 256):
        want_steps = _cdiv(4, _cdiv(r, tr))
        t_hw = min(t_hw_cap, max(128, _round_up(_cdiv(hw, want_steps), 128)))

    return tr, t_hw


def _std_kernel(x_ref, o_ref, mean_ref, m2_ref, *, hw, t_hw, tail, last_k):
    """Streaming unbiased std over the lane axis with Chan moment combining."""
    k = pl.program_id(1)

    @pl.when(k == 0)
    def _init():
        mean_ref[...] = jnp.zeros_like(mean_ref)
        m2_ref[...] = jnp.zeros_like(m2_ref)

    def accumulate(n_b, masked):
        x = x_ref[...].astype(jnp.float32)
        valid = None
        if masked:
            col = jax.lax.broadcasted_iota(jnp.int32, x.shape, 1)
            valid = col < n_b
            x = jnp.where(valid, x, 0.0)
        s_b = jnp.sum(x, axis=-1, keepdims=True)
        mean_b = s_b * jnp.float32(1.0 / n_b)
        d = x - mean_b
        if masked:
            d = jnp.where(valid, d, 0.0)
        m2_b = jnp.sum(d * d, axis=-1, keepdims=True)

        # Chan parallel-combine of (mean, M2): n_a elements already folded in.
        n_a_f = (k * t_hw).astype(jnp.float32)
        n_b_f = jnp.float32(n_b)
        w_b = n_b_f / (n_a_f + n_b_f)
        delta = mean_b - mean_ref[...]
        mean_ref[...] = mean_ref[...] + delta * w_b
        m2_ref[...] = m2_ref[...] + m2_b + (delta * delta) * (n_a_f * w_b)

    if tail == 0:
        # Every hw block is full: no mask work anywhere.
        accumulate(t_hw, masked=False)
    else:
        # Mask only the final partial hw block (gated; not paid on every k).
        @pl.when(k < last_k)
        def _full_blocks():
            accumulate(t_hw, masked=False)

        @pl.when(k == last_k)
        def _tail_block():
            accumulate(tail, masked=True)

    @pl.when(k == last_k)
    def _finalize():
        # ddof=1; hw == 1 gives 0/0 -> NaN, matching torch.std.
        var = m2_ref[...] / jnp.float32(hw - 1)
        o_ref[...] = jnp.sqrt(jnp.maximum(var, 0.0)).astype(o_ref.dtype)


def std_pool(x, *, tile_budget_bytes=None):
    """StdPool forward: x (b, c, h, w) -> (b, c, 1, 1) unbiased std over h*w.

    Matches `x.view(b, c, -1).std(dim=2, keepdim=True).reshape(b, c, 1, 1)`:
    ddof=1 (hw == 1 therefore yields NaN, like PyTorch) and the output dtype
    equals the input dtype (accumulation is f32 inside the kernel).
    """
    b, c, h, w = x.shape
    hw = h * w
    r = b * c
    itemsize = jnp.dtype(x.dtype).itemsize

    x_flat = x.reshape(r, hw)                        # contiguous reshape: free

    phys_vmem = _physical_vmem_bytes()
    if tile_budget_bytes is None:
        # Larger tiles on v5e/v6e (128 MiB VMEM), tighter on v7x (64 MiB).
        tile_budget_bytes = int(min(max(phys_vmem // 3, 8 << 20), 40 << 20))

    tr, t_hw = _choose_tiles(r, hw, itemsize, tile_budget_bytes)
    grid = (_cdiv(r, tr), _cdiv(hw, t_hw))
    last_k = grid[1] - 1
    tail = hw % t_hw

    kernel = functools.partial(_std_kernel, hw=hw, t_hw=t_hw, tail=tail,
                               last_k=last_k)

    grid_spec = pltpu.PrefetchScalarGridSpec(
        num_scalar_prefetch=0,
        grid=grid,
        # TODO(synk): sweep pipeline_mode=pl.Buffered(3) here once measured;
        # VMEM accounting allows a 3rd buffer on v5e/v6e, tight on v7x.
        in_specs=[pl.BlockSpec((tr, t_hw), lambda i, k: (i, k))],
        out_specs=pl.BlockSpec((tr, 1), lambda i, k: (i, 0)),
        scratch_shapes=[pltpu.VMEM((tr, 1), jnp.float32),   # running mean
                        pltpu.VMEM((tr, 1), jnp.float32)],  # running M2
    )

    # Scoped-VMEM budget: double-buffered input block + ~3 block-sized f32
    # intermediates + headroom, capped at 3/4 of physical VMEM.
    vmem_est = 2 * tr * t_hw * itemsize + 3 * tr * t_hw * 4 + (4 << 20)
    vmem_limit = int(min(max(vmem_est, 16 << 20),
                         max(phys_vmem * 3 // 4, 16 << 20)))

    cost = pl.CostEstimate(
        flops=int(5 * r * hw),            # cast, sub, square + two reduce-adds
        transcendentals=int(r),           # final sqrt per row
        bytes_accessed=int(r * hw * itemsize + r * itemsize),
    )

    out = pl.pallas_call(
        kernel,
        out_shape=jax.ShapeDtypeStruct((r, 1), x.dtype),
        grid_spec=grid_spec,
        compiler_params=pltpu.CompilerParams(
            dimension_semantics=("parallel", "arbitrary"),
            vmem_limit_bytes=vmem_limit,
        ),
        cost_estimate=cost,
    )(x_flat)

    # The (r, 1) output store is lane-sparse, but output traffic is negligible
    # next to the streamed input read.
    # TODO(synk): for r <= 8 with huge hw on v7x, split hw across the parallel
    # axis (partial (r, 2) moments + tiny combine) so both TensorCores engage.
    # TODO(synk): if bf16 on v7x is still VALU-bound after the gated tail
    # mask, offload the lane reductions to the idle MXU (x @ ones columns).
    return out.reshape(b, c, 1, 1)


if __name__ == "__main__":
    # Primary check: the module's nominal small shape.
    key = jax.random.PRNGKey(0)
    b, c, h, w = 2, 4, 16, 16
    x = jax.random.normal(key, (b, c, h, w), dtype=jnp.float32)
    y = jax.block_until_ready(std_pool(x))
    ref = jnp.std(x.reshape(b, c, -1), axis=2, ddof=1).reshape(b, c, 1, 1)
    assert y.shape == (b, c, 1, 1)
    assert jnp.allclose(y, ref, atol=1e-5, rtol=1e-5)

    # Odd sizes (rows not a multiple of 8, hw not a multiple of 128).
    x2 = jax.random.normal(jax.random.PRNGKey(1), (1, 5, 9, 11),
                           dtype=jnp.float32)
    y2 = jax.block_until_ready(std_pool(x2))
    ref2 = jnp.std(x2.reshape(1, 5, -1), axis=2, ddof=1).reshape(1, 5, 1, 1)
    assert jnp.allclose(y2, ref2, atol=1e-5, rtol=1e-5)

    # Tiny tile budget forces multiple hw blocks + masked tail + Chan combine
    # + a partial final row block.
    x3 = jax.random.normal(jax.random.PRNGKey(2), (2, 8, 16, 18),
                           dtype=jnp.float32)
    y3 = jax.block_until_ready(std_pool(x3, tile_budget_bytes=4096))
    ref3 = jnp.std(x3.reshape(16, -1), axis=1, ddof=1).reshape(2, 8, 1, 1)
    assert jnp.allclose(y3, ref3, atol=1e-5, rtol=1e-5)

    # bf16 input -> bf16 std (f32 accumulation inside the kernel).
    x4 = jax.random.normal(jax.random.PRNGKey(3), (2, 4, 32, 32),
                           dtype=jnp.float32).astype(jnp.bfloat16)
    y4 = jax.block_until_ready(std_pool(x4))
    ref4 = jnp.std(x4.astype(jnp.float32).reshape(8, -1), axis=1,
                   ddof=1).reshape(2, 4, 1, 1)
    assert y4.dtype == jnp.bfloat16
    assert jnp.allclose(y4.astype(jnp.float32), ref4, atol=1e-2, rtol=2e-2)

    print("KERNEL_OK")
</pallas_src>

<mosaic_0001>
module attributes {stable_mosaic.version = 11 : i64} {
  func.func @_std_kernel(%arg0: i32, %arg1: i32, %arg2: memref<8x256xf32, #tpu.memory_space<vmem>>, %arg3: memref<8x1xf32, #tpu.memory_space<vmem>>, %arg4: memref<8x1xf32, #tpu.memory_space<vmem>>, %arg5: memref<8x1xf32, #tpu.memory_space<vmem>>) attributes {dimension_semantics = [#tpu.dimension_semantics<parallel>, #tpu.dimension_semantics<arbitrary>], iteration_bounds = array<i64: 1, 1>, scalar_prefetch = 0 : i64, scratch_operands = 2 : i64, tpu.core_type = #tpu.core_type<tc>, window_params = [{transform_indices = @transform_0, window_bounds = array<i64: 8, 256>}, {transform_indices = @transform_1, window_bounds = array<i64: 8, 1>}]} {
    %c0_i32 = arith.constant 0 : i32
    %0 = arith.cmpi eq, %arg1, %c0_i32 : i32
    %1 = arith.extui %0 : i1 to i32
    %c0_i32_0 = arith.constant 0 : i32
    %2 = arith.cmpi ne, %1, %c0_i32_0 : i32
    scf.if %2 {
      %cst_18 = arith.constant 0.000000e+00 : f32
      %35 = vector.broadcast %cst_18 : f32 to vector<8x1xf32>
      %c0_19 = arith.constant 0 : index
      %c0_20 = arith.constant 0 : index
      %36 = vector.load %arg4[%c0_19, %c0_20] : memref<8x1xf32, #tpu.memory_space<vmem>>, vector<8x1xf32>
      tpu.vector_store %arg4[%c0_19, %c0_20], %35 {strides = array<i32>} : memref<8x1xf32, #tpu.memory_space<vmem>>, vector<8x1xf32>,
      %cst_21 = arith.constant 0.000000e+00 : f32
      %37 = vector.broadcast %cst_21 : f32 to vector<8x1xf32>
      %c0_22 = arith.constant 0 : index
      %c0_23 = arith.constant 0 : index
      %38 = vector.load %arg5[%c0_22, %c0_23] : memref<8x1xf32, #tpu.memory_space<vmem>>, vector<8x1xf32>
      tpu.vector_store %arg5[%c0_22, %c0_23], %37 {strides = array<i32>} : memref<8x1xf32, #tpu.memory_space<vmem>>, vector<8x1xf32>,
    } else {
    }
    %c0 = arith.constant 0 : index
    %c0_1 = arith.constant 0 : index
    %3 = vector.load %arg2[%c0, %c0_1] : memref<8x256xf32, #tpu.memory_space<vmem>>, vector<8x256xf32>
    %cst = arith.constant dense<0.000000e+00> : vector<8xf32>
    %4 = vector.multi_reduction <add>, %3, %cst [1] : vector<8x256xf32> to vector<8xf32>
    %5 = vector.shape_cast %4 : vector<8xf32> to vector<8x1xf32>
    %cst_2 = arith.constant 3.906250e-03 : f32
    %6 = vector.broadcast %cst_2 : f32 to vector<8x1xf32>
    %7 = arith.mulf %5, %6 : vector<8x1xf32>
    %8 = vector.broadcast %7 : vector<8x1xf32> to vector<8x256xf32>
    %9 = arith.subf %3, %8 : vector<8x256xf32>
    %10 = arith.mulf %9, %9 : vector<8x256xf32>
    %cst_3 = arith.constant dense<0.000000e+00> : vector<8xf32>
    %11 = vector.multi_reduction <add>, %10, %cst_3 [1] : vector<8x256xf32> to vector<8xf32>
    %12 = vector.shape_cast %11 : vector<8xf32> to vector<8x1xf32>
    %c256_i32 = arith.constant 256 : i32
    %13 = arith.muli %arg1, %c256_i32 : i32
    %14 = arith.sitofp %13 : i32 to f32
    %cst_4 = arith.constant 2.560000e+02 : f32
    %15 = arith.addf %14, %cst_4 : f32
    %cst_5 = arith.constant 2.560000e+02 : f32
    %16 = arith.divf %cst_5, %15 : f32
    %c0_6 = arith.constant 0 : index
    %c0_7 = arith.constant 0 : index
    %17 = vector.load %arg4[%c0_6, %c0_7] : memref<8x1xf32, #tpu.memory_space<vmem>>, vector<8x1xf32>
    %18 = arith.subf %7, %17 : vector<8x1xf32>
    %c0_8 = arith.constant 0 : index
    %c0_9 = arith.constant 0 : index
    %19 = vector.load %arg4[%c0_8, %c0_9] : memref<8x1xf32, #tpu.memory_space<vmem>>, vector<8x1xf32>
    %20 = vector.broadcast %16 : f32 to vector<8x1xf32>
    %21 = arith.mulf %18, %20 : vector<8x1xf32>
    %22 = arith.addf %19, %21 : vector<8x1xf32>
    %c0_10 = arith.constant 0 : index
    %c0_11 = arith.constant 0 : index
    %23 = vector.load %arg4[%c0_10, %c0_11] : memref<8x1xf32, #tpu.memory_space<vmem>>, vector<8x1xf32>
    tpu.vector_store %arg4[%c0_10, %c0_11], %22 {strides = array<i32>} : memref<8x1xf32, #tpu.memory_space<vmem>>, vector<8x1xf32>,
    %c0_12 = arith.constant 0 : index
    %c0_13 = arith.constant 0 : index
    %24 = vector.load %arg5[%c0_12, %c0_13] : memref<8x1xf32, #tpu.memory_space<vmem>>, vector<8x1xf32>
    %25 = arith.addf %24, %12 : vector<8x1xf32>
    %26 = arith.mulf %18, %18 : vector<8x1xf32>
    %27 = arith.mulf %14, %16 : f32
    %28 = vector.broadcast %27 : f32 to vector<8x1xf32>
    %29 = arith.mulf %26, %28 : vector<8x1xf32>
    %30 = arith.addf %25, %29 : vector<8x1xf32>
    %c0_14 = arith.constant 0 : index
    %c0_15 = arith.constant 0 : index
    %31 = vector.load %arg5[%c0_14, %c0_15] : memref<8x1xf32, #tpu.memory_space<vmem>>, vector<8x1xf32>
    tpu.vector_store %arg5[%c0_14, %c0_15], %30 {strides = array<i32>} : memref<8x1xf32, #tpu.memory_space<vmem>>, vector<8x1xf32>,
    %c0_i32_16 = arith.constant 0 : i32
    %32 = arith.cmpi eq, %arg1, %c0_i32_16 : i32
    %33 = arith.extui %32 : i1 to i32
    %c0_i32_17 = arith.constant 0 : i32
    %34 = arith.cmpi ne, %33, %c0_i32_17 : i32
    scf.if %34 {
      %c0_18 = arith.constant 0 : index
      %c0_19 = arith.constant 0 : index
      %35 = vector.load %arg5[%c0_18, %c0_19] : memref<8x1xf32, #tpu.memory_space<vmem>>, vector<8x1xf32>
      %cst_20 = arith.constant 2.550000e+02 : f32
      %36 = vector.broadcast %cst_20 : f32 to vector<8x1xf32>
      %37 = arith.divf %35, %36 : vector<8x1xf32>
      %cst_21 = arith.constant 0.000000e+00 : f32
      %38 = vector.broadcast %cst_21 : f32 to vector<8x1xf32>
      %39 = arith.maximumf %37, %38 : vector<8x1xf32>
      %40 = math.sqrt %39 : vector<8x1xf32>
      %c0_22 = arith.constant 0 : index
      %c0_23 = arith.constant 0 : index
      %41 = vector.load %arg3[%c0_22, %c0_23] : memref<8x1xf32, #tpu.memory_space<vmem>>, vector<8x1xf32>
      tpu.vector_store %arg3[%c0_22, %c0_23], %40 {strides = array<i32>} : memref<8x1xf32, #tpu.memory_space<vmem>>, vector<8x1xf32>,
    } else {
    }
    return
  }
  func.func @transform_0(%arg0: i32, %arg1: i32) -> (i32, i32) {
    %c0_i32 = arith.constant 0 : i32
    return %arg0, %arg1 : i32, i32
  }
  func.func @transform_1(%arg0: i32, %arg1: i32) -> (i32, i32) {
    %c0_i32 = arith.constant 0 : i32
    %c0_i32_0 = arith.constant 0 : i32
    return %arg0, %c0_i32 : i32, i32
  }
}

</mosaic_0001>

<bundles_post_ra>
// kernel: tpu_custom_call.1
= control target key start
LH: loop header
LB: loop body
LE: loop exit
PB: predicated region body
PF: predicated region fallthrough
CT: control target
= control target key end

     0   :  { %6 = vsyncpa [#allocation5], 0  ;;  %s108_s6 = smov [#allocation4]   ;;  %s131_s0 = inlined_call_operand.hbm [shape: f32[8,256], index: 0, kind: input, shape index: {}]   ;;  %s132_s1 = inlined_call_operand.vmem [shape: f32[8,1], index: 1, kind: output, shape index: {}]  }
   0x1   :  { %s13_s7 = sshll.u32 %s108_s6, 4  ;;  %s14_s7 = int_to_ptr.vmem [resolvable:$true] %s13_s7 }
   0x2   :  { %s94_s8 = scalar_lea.vmem %s14_s7, 256  ;;  %p99_p1 = scmp.lt.s32.totalorder %s14_s7, %s14_s7 }
   0x3   :  { %p95_p0 = scmp.ne.s32.totalorder %s14_s7, %s94_s8  ;;  %p100_p2 = scmp.lt.s32.totalorder %s94_s8, %s94_s8 }
   0x5   :  { %p101_p3 = por %p100_p2, %p99_p1 }
   0x7   :  { %p102_p4 = pnand %p101_p3, %p95_p0 }
   0x9   :  { %105 = shalt.err (!%p102_p4)
}
   0xa   :  { %16 = dma.hbm_to_vmem [thread:$0]  %s131_s0, 256, %s14_s7, [#allocation5]  }
   0xb   :  { %106 = dma.done.wait [#allocation5], 256  }
   0xc   :  { %107 = vsyncadd [#allocation5], 4294967040  ;;  %vm24_vm0 = vcmask 7168   ;;  %v109_v0 = vmov 0.0   ;;  %v27_v1 = vld [vmem:[#allocation4] sm:$0xff]  ;;  %v28_v2 = vld [vmem:[#allocation4 + $0x8] sm:$0xff] }
   0xd   :  { %25 = vst.msk [vmem:[#allocation2] sm:$0xff] %vm24_vm0, %v109_v0  ;;  %26 = vst.msk [vmem:[#allocation3] sm:$0xff] %vm24_vm0, %v109_v0  ;;  %v29_v3 = vadd.f32 %v28_v2, %v27_v1 }
   0xf   :  { %30 = vadd.xlane.f32.xlu0 %v29_v3 }
  0x14   :  { %v47_v5 = vld [vmem:[#allocation2] sm:$0xff]  ;;  %v54_v15 = vld [vmem:[#allocation3] sm:$0xff] }
  0x98   :  { %v31_v4 = vpop.xlane.xlu0 %30 }
  0x99   :  { %v32_v6 = vmul.f32 0.00390625, %v31_v4 }
  0x9b   :  { %v48_v7 = vsub.f32 %v32_v6, %v47_v5  ;;  %v33_v8 = vsub.f32 %v27_v1, %v32_v6  ;;  %v34_v9 = vsub.f32 %v28_v2, %v32_v6 }
  0x9d   :  { %v51_v10 = vadd.f32 %v48_v7, %v47_v5  ;;  %v35_v11 = vmul.f32 %v33_v8, %v33_v8  ;;  %v36_v12 = vmul.f32 %v34_v9, %v34_v9  ;;  %v56_v14 = vmul.f32 %v48_v7, %v48_v7 }
  0x9f   :  { %53 = vst.msk [vmem:[#allocation2] sm:$0xff] %vm24_vm0, %v51_v10  ;;  %v37_v13 = vadd.f32 %v36_v12, %v35_v11  ;;  %v59_v18 = vmul.f32 0.0, %v56_v14 }
  0xa1   :  { %38 = vadd.xlane.f32.xlu0 %v37_v13 }
 0x12a   :  { %v39_v16 = vpop.xlane.xlu0 %38 }
 0x12b   :  { %v55_v17 = vadd.f32 %v54_v15, %v39_v16 }
 0x12d   :  { %v60_v19 = vadd.f32 %v59_v18, %v55_v17 }
 0x12f   :  { %61 = vst.msk [vmem:[#allocation3] sm:$0xff] %vm24_vm0, %v60_v19 }
 0x136   :  { %v65_v20 = vld [vmem:[#allocation3] sm:$0xff] }
 0x137   :  { %v67_v21 = vmul.f32 0.003921569, %v65_v20 }
 0x139   :  { %v68_v22 = vmax.f32 %v67_v21, 0.0 }
 0x13b   :  { %84 = vrsqrt.f32 %v68_v22  ;;  %vm71_vm1 = vcmp.eq.f32.partialorder %v68_v22, inf  ;;  %v74_v25 = vand.u32 2147483648, %v68_v22  ;;  %vm73_vm2 = vcmp.eq.f32.partialorder %v68_v22, 0.0 }
 0x148   :  { %v85_v23 = vpop.eup %84 }
 0x149   :  { %v70_v24 = vmul.f32 %v85_v23, %v68_v22 }
 0x14b   :  { %v72_v26 = vsel %vm71_vm1, %v68_v22, %v70_v24 }
 0x14c   :  { %v75_v27 = vsel %vm73_vm2, %v74_v25, %v72_v26 }
 0x14d   :  { %76 = vst.msk [vmem:[%s132_s1] sm:$0xff] %vm24_vm0, %v75_v27 }
 0x14e   :  { %81 = vsyncpa [#allocation5], 1 }

</bundles_post_ra>
